<compile_context>
chip_gen: v7x
topology: tpu7x:2x2x1
jax: 0.10.0
libtpu: 0.0.40
codegen_flags: <defaults>
</compile_context>

<pallas_src>
import functools

import jax
import jax.numpy as jnp
from jax.experimental import pallas as pl
from jax.experimental.pallas import tpu as pltpu


def _round_up(a, b):
    return (a + b - 1) // b * b


def _mlp_kernel(n_layers, in_dim0, x_ref, w_ref, b_ref, o_ref):
    """Fused Linear(+bias)+ReLU chain on one row tile.

    x_ref: (TILE_ROWS, in_dim0)        activations (f32 or bf16)
    w_ref: (n_layers, W_PAD, W_PAD)    zero-padded weights, (in, out) layout
    b_ref: (n_layers, 1, W_PAD)        zero-padded biases, f32
    o_ref: (TILE_ROWS, W_PAD)          lane-dense f32 output (cols >= out_dim are 0)
    """
    h = x_ref[...]
    for layer in range(n_layers):
        if layer == 0 and in_dim0 != w_ref.shape[1]:
            # Only the first layer needs a row slice (x is in_dim0 wide); later
            # layers use the full 128-wide padded weight (zero rows contribute 0).
            w = w_ref[layer, :in_dim0, :]
        else:
            w = w_ref[layer]
        # MXU matmul: cast h to the (possibly bf16) weight dtype exactly once per
        # layer; accumulation stays in f32.
        h = jnp.dot(h.astype(w.dtype), w, preferred_element_type=jnp.float32)
        h = h + b_ref[layer]                 # (1, W_PAD) f32, sublane-broadcast
        if layer < n_layers - 1:
            h = jnp.maximum(h, 0.0)          # ReLU between Linear layers only
    o_ref[...] = h.astype(o_ref.dtype)


def gat_mlp_forward(x, weights, biases, *, matmul_dtype=jnp.bfloat16,
                    max_tile_rows=512):
    """Run the GAT_mlp forward pass in one fused Pallas kernel.

    x:        (rows, in_features) float32
    weights:  list of (in_i, out_i) float32 arrays (transpose of torch's weight)
    biases:   list of (out_i,) float32 arrays
    returns:  (rows, out_last) float32
    """
    n_layers = len(weights)
    rows, in_dim0 = x.shape
    out_dim = weights[-1].shape[1]

    # Feature padding: everything lives in a W_PAD-wide lane-dense slab.
    dims = [in_dim0] + [w.shape[1] for w in weights]
    w_pad = _round_up(max(dims), 128)

    # Pack all layer weights / biases into single zero-padded operands.
    w_packed = jnp.zeros((n_layers, w_pad, w_pad), matmul_dtype)
    b_packed = jnp.zeros((n_layers, 1, w_pad), jnp.float32)
    for l, (w, b) in enumerate(zip(weights, biases)):
        w_packed = w_packed.at[l, :w.shape[0], :w.shape[1]].set(
            w.astype(matmul_dtype))
        b_packed = b_packed.at[l, 0, :b.shape[0]].set(b.astype(jnp.float32))

    # Row tiling (tile is a multiple of 8 sublanes, capped for VMEM headroom).
    tile_rows = min(max_tile_rows, _round_up(rows, 8))
    rows_padded = _round_up(rows, tile_rows)
    x_in = x.astype(matmul_dtype)
    if rows_padded != rows:
        x_in = jnp.pad(x_in, ((0, rows_padded - rows), (0, 0)))
    grid = (rows_padded // tile_rows,)

    flops = 2 * rows_padded * sum(w.shape[0] * w.shape[1] for w in weights)
    bytes_accessed = (x_in.size * x_in.dtype.itemsize
                      + w_packed.size * w_packed.dtype.itemsize
                      + b_packed.size * 4
                      + rows_padded * w_pad * 4)

    kernel = functools.partial(_mlp_kernel, n_layers, in_dim0)

    out_padded = pl.pallas_call(
        kernel,
        out_shape=jax.ShapeDtypeStruct((rows_padded, w_pad), jnp.float32),
        grid_spec=pltpu.PrefetchScalarGridSpec(
            num_scalar_prefetch=0,
            grid=grid,
            in_specs=[
                pl.BlockSpec((tile_rows, in_dim0), lambda i: (i, 0)),
                pl.BlockSpec((n_layers, w_pad, w_pad), lambda i: (0, 0, 0)),
                pl.BlockSpec((n_layers, 1, w_pad), lambda i: (0, 0, 0)),
            ],
            out_specs=pl.BlockSpec((tile_rows, w_pad), lambda i: (i, 0)),
        ),
        compiler_params=pltpu.CompilerParams(
            dimension_semantics=("parallel",)),
        cost_estimate=pl.CostEstimate(
            flops=flops, transcendentals=0, bytes_accessed=bytes_accessed),
    )(x_in, w_packed, b_packed)

    # Strip row padding and the lane padding of the 19-wide last layer.
    return out_padded[:rows, :out_dim]


def init_gat_mlp_params(key, mlp_channels, input_channel, last_layer=True):
    """Deterministic parameter init mirroring the module's layer-shape logic.

    PyTorch nn.Linear default init: U(-1/sqrt(fan_in), 1/sqrt(fan_in)) for both
    weight and bias; reproduced deterministically with JAX PRNG (values are
    synthetic, shapes/semantics match).
    """
    dims = [input_channel] + list(mlp_channels)
    if last_layer:
        dims = dims + [64, 19]

    weights, biases = [], []
    for i in range(len(dims) - 1):
        fan_in, fan_out = dims[i], dims[i + 1]
        key, kw, kb = jax.random.split(key, 3)
        bound = 1.0 / (fan_in ** 0.5)
        # Stored as (in, out) = transpose of PyTorch's (out, in) weight.
        w = jax.random.uniform(kw, (fan_in, fan_out), jnp.float32, -bound, bound)
        b = jax.random.uniform(kb, (fan_out,), jnp.float32, -bound, bound)
        weights.append(w)
        biases.append(b)
    return weights, biases


if __name__ == "__main__":
    # Small shapes consistent with the module: batch=2, seq=8, hidden=32.
    batch, seq, input_channel = 2, 8, 32
    mlp_channels = [48]           # -> dims [32, 48, 64, 19]
    last_layer = True

    key = jax.random.PRNGKey(0)
    key, kx = jax.random.split(key)
    x = jax.random.normal(kx, (batch, seq, input_channel), jnp.float32)

    weights, biases = init_gat_mlp_params(
        jax.random.PRNGKey(1234567), mlp_channels, input_channel, last_layer)

    # Linear acts on the last dim; flatten leading dims for the kernel.
    x2d = x.reshape(-1, input_channel)

    # Pure-JAX f32 reference.
    h = x2d
    for i, (w, b) in enumerate(zip(weights, biases)):
        h = h @ w + b
        if i < len(weights) - 1:
            h = jnp.maximum(h, 0.0)
    ref = h.reshape(batch, seq, -1)

    # f32-fed MXU path (tight numerical check).
    out_f32 = gat_mlp_forward(x2d, weights, biases, matmul_dtype=jnp.float32)
    out_f32 = jax.block_until_ready(out_f32).reshape(batch, seq, -1)
    assert out_f32.shape == (batch, seq, 19)
    assert jnp.allclose(out_f32, ref, atol=1e-4, rtol=1e-4)

    # Default bf16-fed MXU path (f32 accumulation) — looser tolerance.
    out_bf16 = gat_mlp_forward(x2d, weights, biases, matmul_dtype=jnp.bfloat16)
    out_bf16 = jax.block_until_ready(out_bf16).reshape(batch, seq, -1)
    assert out_bf16.shape == (batch, seq, 19)
    assert jnp.allclose(out_bf16, ref, atol=5e-2, rtol=5e-2)

    print("KERNEL_OK")
</pallas_src>

<mosaic_0001>
module attributes {stable_mosaic.version = 11 : i64} {
  func.func @_mlp_kernel(%arg0: i32, %arg1: memref<16x32xf32, #tpu.memory_space<vmem>>, %arg2: memref<3x128x128xf32, #tpu.memory_space<vmem>>, %arg3: memref<3x1x128xf32, #tpu.memory_space<vmem>>, %arg4: memref<16x128xf32, #tpu.memory_space<vmem>>) attributes {dimension_semantics = [#tpu.dimension_semantics<parallel>], iteration_bounds = array<i64: 1>, scalar_prefetch = 0 : i64, scratch_operands = 0 : i64, tpu.core_type = #tpu.core_type<tc>, window_params = [{transform_indices = @transform_0, window_bounds = array<i64: 16, 32>}, {pipeline_mode = #tpu.pipeline_mode<synchronous>, transform_indices = @transform_1, window_bounds = array<i64: 3, 128, 128>}, {pipeline_mode = #tpu.pipeline_mode<synchronous>, transform_indices = @transform_2, window_bounds = array<i64: 3, 1, 128>}, {transform_indices = @transform_3, window_bounds = array<i64: 16, 128>}]} {
    %c0 = arith.constant 0 : index
    %c0_0 = arith.constant 0 : index
    %0 = vector.load %arg1[%c0, %c0_0] : memref<16x32xf32, #tpu.memory_space<vmem>>, vector<16x32xf32>
    %c0_1 = arith.constant 0 : index
    %c0_2 = arith.constant 0 : index
    %c0_3 = arith.constant 0 : index
    %1 = vector.load %arg2[%c0_1, %c0_2, %c0_3] : memref<3x128x128xf32, #tpu.memory_space<vmem>>, vector<1x32x128xf32>
    %2 = vector.shape_cast %1 : vector<1x32x128xf32> to vector<32x128xf32>
    %cst = arith.constant dense<0.000000e+00> : vector<16x128xf32>
    %3 = tpu.matmul %0, %2, %cst {dimension_numbers = #tpu.dot_dimension_numbers<[1], [0], [0], [1], [0, 0, 1, 1], [], []>} : vector<16x32xf32>, vector<32x128xf32>, vector<16x128xf32> -> vector<16x128xf32>
    %c0_4 = arith.constant 0 : index
    %c0_5 = arith.constant 0 : index
    %c0_6 = arith.constant 0 : index
    %4 = vector.load %arg3[%c0_4, %c0_5, %c0_6] : memref<3x1x128xf32, #tpu.memory_space<vmem>>, vector<1x1x128xf32>
    %5 = vector.shape_cast %4 : vector<1x1x128xf32> to vector<1x128xf32>
    %6 = vector.broadcast %5 : vector<1x128xf32> to vector<16x128xf32>
    %7 = arith.addf %3, %6 : vector<16x128xf32>
    %cst_7 = arith.constant 0.000000e+00 : f32
    %8 = vector.broadcast %cst_7 : f32 to vector<16x128xf32>
    %9 = arith.maximumf %7, %8 : vector<16x128xf32>
    %c1 = arith.constant 1 : index
    %c0_8 = arith.constant 0 : index
    %c0_9 = arith.constant 0 : index
    %10 = vector.load %arg2[%c1, %c0_8, %c0_9] : memref<3x128x128xf32, #tpu.memory_space<vmem>>, vector<1x128x128xf32>
    %11 = vector.shape_cast %10 : vector<1x128x128xf32> to vector<128x128xf32>
    %cst_10 = arith.constant dense<0.000000e+00> : vector<16x128xf32>
    %12 = tpu.matmul %9, %11, %cst_10 {dimension_numbers = #tpu.dot_dimension_numbers<[1], [0], [0], [1], [0, 0, 1, 1], [], []>} : vector<16x128xf32>, vector<128x128xf32>, vector<16x128xf32> -> vector<16x128xf32>
    %c1_11 = arith.constant 1 : index
    %c0_12 = arith.constant 0 : index
    %c0_13 = arith.constant 0 : index
    %13 = vector.load %arg3[%c1_11, %c0_12, %c0_13] : memref<3x1x128xf32, #tpu.memory_space<vmem>>, vector<1x1x128xf32>
    %14 = vector.shape_cast %13 : vector<1x1x128xf32> to vector<1x128xf32>
    %15 = vector.broadcast %14 : vector<1x128xf32> to vector<16x128xf32>
    %16 = arith.addf %12, %15 : vector<16x128xf32>
    %cst_14 = arith.constant 0.000000e+00 : f32
    %17 = vector.broadcast %cst_14 : f32 to vector<16x128xf32>
    %18 = arith.maximumf %16, %17 : vector<16x128xf32>
    %c2 = arith.constant 2 : index
    %c0_15 = arith.constant 0 : index
    %c0_16 = arith.constant 0 : index
    %19 = vector.load %arg2[%c2, %c0_15, %c0_16] : memref<3x128x128xf32, #tpu.memory_space<vmem>>, vector<1x128x128xf32>
    %20 = vector.shape_cast %19 : vector<1x128x128xf32> to vector<128x128xf32>
    %cst_17 = arith.constant dense<0.000000e+00> : vector<16x128xf32>
    %21 = tpu.matmul %18, %20, %cst_17 {dimension_numbers = #tpu.dot_dimension_numbers<[1], [0], [0], [1], [0, 0, 1, 1], [], []>} : vector<16x128xf32>, vector<128x128xf32>, vector<16x128xf32> -> vector<16x128xf32>
    %c2_18 = arith.constant 2 : index
    %c0_19 = arith.constant 0 : index
    %c0_20 = arith.constant 0 : index
    %22 = vector.load %arg3[%c2_18, %c0_19, %c0_20] : memref<3x1x128xf32, #tpu.memory_space<vmem>>, vector<1x1x128xf32>
    %23 = vector.shape_cast %22 : vector<1x1x128xf32> to vector<1x128xf32>
    %24 = vector.broadcast %23 : vector<1x128xf32> to vector<16x128xf32>
    %25 = arith.addf %21, %24 : vector<16x128xf32>
    %c0_21 = arith.constant 0 : index
    %c0_22 = arith.constant 0 : index
    %26 = vector.load %arg4[%c0_21, %c0_22] : memref<16x128xf32, #tpu.memory_space<vmem>>, vector<16x128xf32>
    tpu.vector_store %arg4[%c0_21, %c0_22], %25 {strides = array<i32>} : memref<16x128xf32, #tpu.memory_space<vmem>>, vector<16x128xf32>,
    return
  }
  func.func @transform_0(%arg0: i32) -> (i32, i32) {
    %c0_i32 = arith.constant 0 : i32
    %c0_i32_0 = arith.constant 0 : i32
    return %arg0, %c0_i32 : i32, i32
  }
  func.func @transform_1(%arg0: i32) -> (i32, i32, i32) {
    %c0_i32 = arith.constant 0 : i32
    %c0_i32_0 = arith.constant 0 : i32
    %c0_i32_1 = arith.constant 0 : i32
    %c0_i32_2 = arith.constant 0 : i32
    return %c0_i32, %c0_i32_0, %c0_i32_1 : i32, i32, i32
  }
  func.func @transform_2(%arg0: i32) -> (i32, i32, i32) {
    %c0_i32 = arith.constant 0 : i32
    %c0_i32_0 = arith.constant 0 : i32
    %c0_i32_1 = arith.constant 0 : i32
    %c0_i32_2 = arith.constant 0 : i32
    return %c0_i32, %c0_i32_0, %c0_i32_1 : i32, i32, i32
  }
  func.func @transform_3(%arg0: i32) -> (i32, i32) {
    %c0_i32 = arith.constant 0 : i32
    %c0_i32_0 = arith.constant 0 : i32
    return %arg0, %c0_i32 : i32, i32
  }
}

</mosaic_0001>

<bundles_post_ra>
// kernel: tpu_custom_call.1
= control target key start
LH: loop header
LB: loop body
LE: loop exit
PB: predicated region body
PF: predicated region fallthrough
CT: control target
= control target key end

     0   :  { %8 = vsyncpa [#allocation3], 0  ;;  %s722_s0 = inlined_call_operand.hbm [shape: f32[16,32], index: 0, kind: input, shape index: {}]   ;;  %s723_s1 = inlined_call_operand.hbm [shape: f32[3,128,128], index: 1, kind: input, shape index: {}]   ;;  %s724_s2 = inlined_call_operand.vmem [shape: f32[3,1,128], index: 2, kind: input, shape index: {}]   ;;  %s725_s3 = inlined_call_operand.hbm [shape: f32[16,128], index: 3, kind: output, shape index: {}]  }
   0x1   :  { %9 = vsyncpa [#allocation6], 0 }
   0x2   :  { %10 = vsyncpa [#allocation4], 0  ;;  %s641_s12 = smov [#allocation2]   ;;  %s569_s16 = scalar_lea.hbm %s722_s0, 256 }
   0x3   :  { %s16_s13 = sshll.u32 %s641_s12, 4  ;;  %p570_p0 = scmp.ne.s32.totalorder %s722_s0, %s569_s16  ;;  %s17_s13 = int_to_ptr.vmem [resolvable:$true] %s16_s13 }
   0x4   :  { %p573_p1 = scmp.lt.u32.totalorder %s569_s16, %s722_s0 }
   0x6   :  { %p575_p2 = pnand %p573_p1, %p570_p0 }
   0x8   :  { %578 = shalt.err (!%p575_p2)
}
   0x9   :  { %s579_s21 = scalar_lea.vmem %s17_s13, 256  ;;  %p584_p4 = scmp.lt.s32.totalorder %s17_s13, %s17_s13 }
   0xa   :  { %p580_p3 = scmp.ne.s32.totalorder %s17_s13, %s579_s21  ;;  %p585_p5 = scmp.lt.s32.totalorder %s579_s21, %s579_s21 }
   0xc   :  { %p586_p6 = por %p585_p5, %p584_p4 }
   0xe   :  { %p587_p7 = pnand %p586_p6, %p580_p3 }
  0x10   :  { %590 = shalt.err (!%p587_p7)
}
  0x11   :  { %s642_s22 = smov 128   ;;  %s643_s23 = smov 8  }
  0x12   :  { %22 = dma.hbm_to_vmem [thread:$0]  %s722_s0, 256, %s17_s13, [#allocation3], %s642_s22, %s642_s22, %s643_s23  }
  0x13   :  { %s644_s26 = smov [#allocation5]   ;;  %s591_s30 = scalar_lea.hbm %s723_s1, 6144 }
  0x14   :  { %s28_s27 = sshll.u32 %s644_s26, 4  ;;  %p592_p8 = scmp.ne.s32.totalorder %s723_s1, %s591_s30  ;;  %s29_s27 = int_to_ptr.vmem [resolvable:$true] %s28_s27 }
  0x15   :  { %p595_p9 = scmp.lt.u32.totalorder %s591_s30, %s723_s1 }
  0x17   :  { %p597_p10 = pnand %p595_p9, %p592_p8 }
  0x19   :  { %600 = shalt.err (!%p597_p10)
}
  0x1a   :  { %s601_s8 = scalar_lea.vmem %s29_s27, 6144  ;;  %p606_p12 = scmp.lt.s32.totalorder %s29_s27, %s29_s27 }
  0x1b   :  { %p602_p11 = scmp.ne.s32.totalorder %s29_s27, %s601_s8  ;;  %p607_p13 = scmp.lt.s32.totalorder %s601_s8, %s601_s8 }
  0x1d   :  { %p608_p0 = por %p607_p13, %p606_p12 }
  0x1f   :  { %p609_p1 = pnand %p608_p0, %p602_p11 }
  0x21   :  { %612 = shalt.err (!%p609_p1)
}
  0x22   :  { %34 = dma.hbm_to_vmem [thread:$0]  %s723_s1, 6144, %s29_s27, [#allocation6], %s642_s22, %s642_s22, %s643_s23  }
  0x23   :  { %635 = dma.done.wait [#allocation3], 256  }
  0x24   :  { %636 = vsyncadd [#allocation3], 4294967040 }
  0x25   :  { %637 = dma.done.wait [#allocation6], 6144  }
  0x26   :  { %638 = vsyncadd [#allocation6], 4294961152  ;;  %vm56_vm0 = vcmask 261120   ;;  %v45_v0 = vld [vmem:[#allocation5] sm:$0xff]  ;;  %v46_v1 = vld [vmem:[#allocation5 + $0x8] sm:$0xff]  ;;  %s645_s15 = smov [#allocation7]  }
  0x27   :  { %v47_v2 = vld [vmem:[#allocation5 + $0x10] sm:$0xff]  ;;  %v492_v3 = vpack.c.bf16 %v46_v1, %v45_v0  ;;  %v48_v4 = vld [vmem:[#allocation5 + $0x18] sm:$0xff]  ;;  %v141_v7 = vld [vmem:[#allocation5 + $0x80] sm:$0xff]  ;;  %s349_s16 = sshll.u32 %s645_s15, 4  ;;  %s350_s16 = int_to_ptr.vmem [resolvable:$true] %s349_s16 }
  0x28   :  { %v43_v5 = vld [vmem:[#allocation2] sm:$0xff]  ;;  %v496_v6 = vpack.c.bf16 %v48_v4, %v47_v2  ;;  %v142_v8 = vld [vmem:[#allocation5 + $0x88] sm:$0xff]  ;;  %v144_v11 = vld [vmem:[#allocation5 + $0x98] sm:$0xff]  ;;  %s613_s17 = scalar_lea.vmem %s350_s16, 256  ;;  %p618_p3 = scmp.lt.s32.totalorder %s350_s16, %s350_s16 }
  0x29   :  { %419 = vmatprep.mubr.msk.f32.mxu0 %vm56_vm0, %v43_v5  ;;  %v143_v9 = vld [vmem:[#allocation5 + $0x90] sm:$0xff]  ;;  %493 = vmatprep.subr.bf16.mxu0 %v492_v3  ;;  %v500_v10 = vpack.c.bf16 %v142_v8, %v141_v7  ;;  %v145_v13 = vld [vmem:[#allocation5 + $0xa0] sm:$0xff]  ;;  %v146_v14 = vld [vmem:[#allocation5 + $0xa8] sm:$0xff]  ;;  %p614_p2 = scmp.ne.s32.totalorder %s350_s16, %s613_s17  ;;  %p619_p4 = scmp.lt.s32.totalorder %s613_s17, %s613_s17 }
  0x2a   :  { %495 = vmatpush3.bf16.msra.mxu0 %v492_v3  ;;  %v504_v12 = vpack.c.bf16 %v144_v11, %v143_v9  ;;  %v508_v15 = vpack.c.bf16 %v146_v14, %v145_v13  ;;  %v44_v16 = vld [vmem:[#allocation2 + $0x8] sm:$0xff]  ;;  %v147_v17 = vld [vmem:[#allocation5 + $0xb0] sm:$0xff]  ;;  %v149_v20 = vld [vmem:[#allocation5 + $0xc0] sm:$0xff] }
  0x2b   :  { %497 = vmatprep.subr.bf16.mxu0 %v496_v6  ;;  %501 = vmatprep.subr.bf16.mxu1 %v500_v10  ;;  %v148_v18 = vld [vmem:[#allocation5 + $0xb8] sm:$0xff]  ;;  %v150_v21 = vld [vmem:[#allocation5 + $0xc8] sm:$0xff]  ;;  %v151_v23 = vld [vmem:[#allocation5 + $0xd0] sm:$0xff]  ;;  %p620_p5 = por %p619_p4, %p618_p3 }
  0x2c   :  { %503 = vmatpush3.bf16.msra.mxu1 %v500_v10  ;;  %v512_v19 = vpack.c.bf16 %v148_v18, %v147_v17  ;;  %v516_v22 = vpack.c.bf16 %v150_v21, %v149_v20  ;;  %v152_v24 = vld [vmem:[#allocation5 + $0xd8] sm:$0xff]  ;;  %v153_v26 = vld [vmem:[#allocation5 + $0xe0] sm:$0xff]  ;;  %v154_v27 = vld [vmem:[#allocation5 + $0xe8] sm:$0xff] }
  0x2d   :  { %505 = vmatprep.subr.bf16.mxu1 %v504_v12  ;;  %v520_v25 = vpack.c.bf16 %v152_v24, %v151_v23  ;;  %v524_v28 = vpack.c.bf16 %v154_v27, %v153_v26  ;;  %v155_v29 = vld [vmem:[#allocation5 + $0xf0] sm:$0xff]  ;;  %v156_v30 = vld [vmem:[#allocation5 + $0xf8] sm:$0xff]  ;;  %v243_v32 = vld [vmem:[#allocation5 + $0x100] sm:$0xff]  ;;  %p621_p6 = pnand %p620_p5, %p614_p2 }
  0x2e   :  { %499 = vmatpush3.bf16.msra.mxu0 %v496_v6  ;;  %v528_v31 = vpack.c.bf16 %v156_v30, %v155_v29  ;;  %v244_v33 = vld [vmem:[#allocation5 + $0x108] sm:$0xff]  ;;  %v245_v34 = vld [vmem:[#allocation5 + $0x110] sm:$0xff]  ;;  %v246_v36 = vld [vmem:[#allocation5 + $0x118] sm:$0xff] }
  0x2f   :  { %v532_v35 = vpack.c.bf16 %v244_v33, %v243_v32  ;;  %v536_v37 = vpack.c.bf16 %v246_v36, %v245_v34  ;;  %v247_v38 = vld [vmem:[#allocation5 + $0x120] sm:$0xff]  ;;  %v248_v39 = vld [vmem:[#allocation5 + $0x128] sm:$0xff]  ;;  %v249_v41 = vld [vmem:[#allocation5 + $0x130] sm:$0xff] }
  0x30   :  { %507 = vmatpush3.bf16.msra.mxu1 %v504_v12  ;;  %v540_v40 = vpack.c.bf16 %v248_v39, %v247_v38  ;;  %v250_v42 = vld [vmem:[#allocation5 + $0x138] sm:$0xff]  ;;  %v251_v44 = vld [vmem:[#allocation5 + $0x140] sm:$0xff]  ;;  %v252_v45 = vld [vmem:[#allocation5 + $0x148] sm:$0xff] }
  0x31   :  { %420 = vmatmul.mubr.msk.f32.vlgmr.msra.gmra.mrb[0].mxu0 %vm56_vm0, %v44_v16  ;;  %509 = vmatprep.subr.bf16.mxu1 %v508_v15  ;;  %v544_v43 = vpack.c.bf16 %v250_v42, %v249_v41  ;;  %v548_v46 = vpack.c.bf16 %v252_v45, %v251_v44  ;;  %v253_v47 = vld [vmem:[#allocation5 + $0x150] sm:$0xff]  ;;  %v254_v48 = vld [vmem:[#allocation5 + $0x158] sm:$0xff]  ;;  %v255_v50 = vld [vmem:[#allocation5 + $0x160] sm:$0xff] }
  0x32   :  { %533 = vmatprep.subr.bf16.mxu0 %v532_v35  ;;  %v552_v49 = vpack.c.bf16 %v254_v48, %v253_v47  ;;  %v256_v51 = vld [vmem:[#allocation5 + $0x168] sm:$0xff]  ;;  %v362_v53 = vld [vmem:[%s724_s2] ss:$0 sm:$0xff]  ;;  %v258_v61 = vld [vmem:[#allocation5 + $0x178] sm:$0xff] }
  0x33   :  { %535 = vmatpush3.bf16.msra.mxu0 %v532_v35  ;;  %v556_v52 = vpack.c.bf16 %v256_v51, %v255_v50  ;;  %v257_v60 = vld [vmem:[#allocation5 + $0x170] sm:$0xff] }
  0x34   :  { %511 = vmatpush3.bf16.msra.mxu1 %v508_v15  ;;  %537 = vmatprep.subr.bf16.mxu0 %v536_v37  ;;  %v560_v62 = vpack.c.bf16 %v258_v61, %v257_v60  ;;  %v366_v63 = vld [vmem:[%s724_s2 + $0x1] ss:$0 sm:$0xff]  ;;  %v368_v6 = vld [vmem:[%s724_s2 + $0x2] ss:$0 sm:$0xff] }
  0x35   :  { %513 = vmatprep.subr.bf16.mxu1 %v512_v19 }
  0x37   :  { %539 = vmatpush3.bf16.msra.mxu0 %v536_v37 }
  0x38   :  { %515 = vmatpush3.bf16.msra.mxu1 %v512_v19  ;;  %541 = vmatprep.subr.bf16.mxu0 %v540_v40 }
  0x39   :  { %517 = vmatprep.subr.bf16.mxu1 %v516_v22 }
  0x3b   :  { %543 = vmatpush3.bf16.msra.mxu0 %v540_v40 }
  0x3c   :  { %519 = vmatpush3.bf16.msra.mxu1 %v516_v22  ;;  %545 = vmatprep.subr.bf16.mxu0 %v544_v43 }
  0x3d   :  { %521 = vmatprep.subr.bf16.mxu1 %v520_v25 }
  0x3f   :  { %547 = vmatpush3.bf16.msra.mxu0 %v544_v43 }
  0x40   :  { %523 = vmatpush3.bf16.msra.mxu1 %v520_v25  ;;  %549 = vmatprep.subr.bf16.mxu0 %v548_v46 }
  0x41   :  { %525 = vmatprep.subr.bf16.mxu1 %v524_v28 }
  0x43   :  { %551 = vmatpush3.bf16.msra.mxu0 %v548_v46 }
  0x44   :  { %527 = vmatpush3.bf16.msra.mxu1 %v524_v28  ;;  %553 = vmatprep.subr.bf16.mxu0 %v552_v49 }
  0x45   :  { %529 = vmatprep.subr.bf16.mxu1 %v528_v31 }
  0x47   :  { %555 = vmatpush3.bf16.msra.mxu0 %v552_v49 }
  0x48   :  { %531 = vmatpush3.bf16.msra.mxu1 %v528_v31  ;;  %557 = vmatprep.subr.bf16.mxu0 %v556_v52 }
  0x4b   :  { %559 = vmatpush3.bf16.msra.mxu0 %v556_v52 }
  0x4c   :  { %561 = vmatprep.subr.bf16.mxu0 %v560_v62 }
  0x4f   :  { %563 = vmatpush3.bf16.msra.mxu0 %v560_v62 }
 0x104   :  { %v421_v54 = vpop.f32.mrb[0].mxu0 }
 0x105   :  { %v135_v55 = vadd.f32 %v421_v54, %v362_v53  ;;  %v129_v56 = vpop.f32.mrb[1].mxu0 }
 0x106   :  { %v130_v57 = vadd.f32 %v362_v53, %v129_v56 }
 0x107   :  { %v139_v59 = vmax.f32 %v135_v55, 0.0 }
 0x108   :  { %v138_v58 = vmax.f32 %v130_v57, 0.0 }
 0x10a   :  { %454 = vmatprep.mubr.f32.mxu1 %v138_v58 }
 0x10b   :  { %455 = vmatmul.mubr.f32.vlgmr.msra.gmra.mrb[0].mxu1 %v139_v59 }
 0x1de   :  { %v456_v0 = vpop.f32.mrb[0].mxu1 }
 0x1df   :  { %v237_v1 = vadd.f32 %v456_v0, %v366_v63  ;;  %v231_v2 = vpop.f32.mrb[1].mxu1 }
 0x1e0   :  { %v232_v3 = vadd.f32 %v366_v63, %v231_v2 }
 0x1e1   :  { %v241_v5 = vmax.f32 %v237_v1, 0.0 }
 0x1e2   :  { %v240_v4 = vmax.f32 %v232_v3, 0.0 }
 0x1e4   :  { %489 = vmatprep.mubr.f32.mxu0 %v240_v4 }
 0x1e5   :  { %490 = vmatmul.mubr.f32.vlgmr.msra.gmra.mrb[2].mxu0 %v241_v5 }
 0x2b8   :  { %v491_v7 = vpop.f32.mrb[2].mxu0 }
 0x2b9   :  { %v339_v8 = vadd.f32 %v491_v7, %v368_v6  ;;  %v333_v9 = vpop.f32.mrb[3].mxu0 }
 0x2ba   :  { %v334_v10 = vadd.f32 %v368_v6, %v333_v9 }
 0x2bb   :  { %343 = vst [vmem:[#allocation7 + $0x8] sm:$0xff] %v339_v8 }
 0x2bc   :  { %342 = vst [vmem:[#allocation7] sm:$0xff] %v334_v10 }
 0x2bd   :  { %624 = shalt.err (!%p621_p6)
}
 0x2be   :  { %s625_s2 = scalar_lea.hbm %s725_s3, 256 }
 0x2bf   :  { %p626_p7 = scmp.ne.s32.totalorder %s725_s3, %s625_s2  ;;  %p629_p8 = scmp.lt.u32.totalorder %s625_s2, %s725_s3 }
 0x2c1   :  { %p631_p9 = pnand %p629_p8, %p626_p7 }
 0x2c3   :  { %634 = shalt.err (!%p631_p9)
}
 0x2c4   :  { %355 = dma.vmem_to_hbm [thread:$0]  %s350_s16, 256, %s725_s3, [#allocation4], %s642_s22, %s642_s22, %s643_s23  }
 0x2c5   :  { %639 = dma.done.wait [#allocation4], 256  }
 0x2c6   :  { %640 = vsyncadd [#allocation4], 4294967040 }
 0x2c7   :  { %359 = vsyncpa [#allocation3], 1 }
 0x2c8   :  { %360 = vsyncpa [#allocation6], 1 }
 0x2c9   :  { %361 = vsyncpa [#allocation4], 1 }

</bundles_post_ra>
